<compile_context>
chip_gen: v7x
topology: tpu7x:2x2x1
jax: 0.10.0
libtpu: 0.0.40
codegen_flags: <defaults>
</compile_context>

<pallas_src>
import types
from functools import partial

import jax
import jax.numpy as jnp
import numpy as np
from jax import lax
from jax.experimental import pallas as pl
from jax.experimental.pallas import tpu as pltpu

_EPS = 1e-8
_AMBIENT = 0.1
_SHININESS = 16  # integer -> lowers to integer_pow (repeated squaring on the VPU)

_LANE = 128
_SUBLANE = 8


def _shade_kernel(cam_ref, nrm_ref, pos_ref, alb_ref, out_ref, n_scr):
    """One (batch, row-tile, view) grid step.

    cam_ref : SMEM f32[V, 6]           (eye_xyz, normalized light_dir_xyz) per view
    nrm_ref : VMEM f32[1, 3, TR, C]    per-pixel normals         (tile)
    pos_ref : VMEM f32[1, 3, TR, C]    per-pixel world positions (tile)
    alb_ref : VMEM f32[1, 3, TR, C]    per-pixel albedo          (tile)
    out_ref : VMEM f32[1, 3, TR, C]    shaded RGB for this view/batch/tile
    n_scr   : VMEM f32[3, TR, C]       normalized-normal cache (view-invariant)
    """
    v = pl.program_id(2)
    eps = jnp.float32(_EPS)

    # View-invariant work: normalize the normals once per (batch, tile) and
    # reuse the cached result for every subsequent view (V is innermost).
    @pl.when(v == 0)
    def _():
        nx = nrm_ref[0, 0]
        ny = nrm_ref[0, 1]
        nz = nrm_ref[0, 2]
        inv_n = lax.rsqrt(nx * nx + ny * ny + nz * nz + eps)
        n_scr[0] = nx * inv_n
        n_scr[1] = ny * inv_n
        n_scr[2] = nz * inv_n

    nx = n_scr[0]
    ny = n_scr[1]
    nz = n_scr[2]

    # eye = camera, light_dir = -camera/||camera|| (precomputed in wrapper)
    ex = cam_ref[v, 0]
    ey = cam_ref[v, 1]
    ez = cam_ref[v, 2]
    lx = cam_ref[v, 3]
    ly = cam_ref[v, 4]
    lz = cam_ref[v, 5]

    px = pos_ref[0, 0]
    py = pos_ref[0, 1]
    pz = pos_ref[0, 2]

    # view direction: eye - position, normalized
    vx = ex - px
    vy = ey - py
    vz = ez - pz
    inv_v = lax.rsqrt(vx * vx + vy * vy + vz * vz + eps)
    vx = vx * inv_v
    vy = vy * inv_v
    vz = vz * inv_v

    # Lambertian diffuse term
    diff = jnp.maximum(nx * lx + ny * ly + nz * lz, 0.0)

    # Blinn-Phong specular: dot with the *unnormalized* half vector, then scale
    # the dot by 1/||h||  (one mul instead of three component normalizations).
    hx = lx + vx
    hy = ly + vy
    hz = lz + vz
    inv_h = lax.rsqrt(hx * hx + hy * hy + hz * hz + eps)
    spec = jnp.maximum((nx * hx + ny * hy + nz * hz) * inv_h, 0.0) ** _SHININESS

    shade = jnp.float32(_AMBIENT) + diff                     # (TR, C)
    out_ref[0] = (alb_ref[0] * shade + spec).astype(out_ref.dtype)


def _pick_row_tile(rows, cols, target_elems):
    """Largest row tile (multiple of 8, or the full extent) with tr*cols <= target."""
    tr = (max(1, target_elems // max(cols, 1)) // _SUBLANE) * _SUBLANE
    tr = max(_SUBLANE, tr)
    if tr >= rows:
        return rows            # single full-extent tile (always a legal block dim)
    return tr                  # multiple of 8; partial last tile handled by Pallas


@partial(jax.jit, static_argnames=("target_tile_elems",))
def mvs_render_pallas(cameras, normals, positions, albedo, *,
                      target_tile_elems=128 * 1024):
    """Multi-view-stack render.

    cameras  : f32[V, 3]
    normals  : f32[B, 3, H, W]   (NCHW)
    positions: f32[B, 3, H, W]
    albedo   : f32[B, 3, H, W]
    returns  : f32[V*B, 3, H, W]  (views concatenated along dim 0, view-major)
    """
    V = cameras.shape[0]
    B, C, H, W = normals.shape
    assert C == 3
    HW = H * W

    # Zero-copy pixel layout selection (no jnp.pad, no output slice).
    lane_dense = (HW % _LANE == 0)
    if lane_dense:
        R, Cw = HW // _LANE, _LANE           # lane-dense slab; free contiguous reshape

        def prep(x):
            return x.astype(jnp.float32).reshape(B, 3, R, Cw)
    else:
        R, Cw = H, W                         # native layout; W is a full-extent block dim

        def prep(x):
            return x.astype(jnp.float32)

    nrm = prep(normals)
    pos = prep(positions)
    alb = prep(albedo)

    tr = _pick_row_tile(R, Cw, target_tile_elems)
    # Make sure v7x's second TensorCore gets work when B and n_tiles are tiny.
    if B * pl.cdiv(R, tr) < 2 and R > _SUBLANE:
        tr = max(_SUBLANE, ((R // 2) // _SUBLANE) * _SUBLANE)
    n_tiles = pl.cdiv(R, tr)

    # Per-view table: [eye_x, eye_y, eye_z, light_x, light_y, light_z]
    cam = cameras.astype(jnp.float32)
    inv_c = lax.rsqrt(jnp.sum(cam * cam, axis=1, keepdims=True) + jnp.float32(_EPS))
    cam_tab = jnp.concatenate([cam, -cam * inv_c], axis=1)  # [V, 6]

    gb_spec = pl.BlockSpec((1, 3, tr, Cw), lambda b, t, v: (b, 0, t, 0))

    out = pl.pallas_call(
        _shade_kernel,
        out_shape=jax.ShapeDtypeStruct((V * B, 3, R, Cw), jnp.float32),
        grid_spec=pltpu.PrefetchScalarGridSpec(
            num_scalar_prefetch=0,
            # View axis innermost: G-buffer block index is constant across v, so
            # inputs are not re-DMA'd per view; the normalized-normal scratch is
            # carried across v (hence "arbitrary" on that axis).
            grid=(B, n_tiles, V),
            in_specs=[
                pl.BlockSpec(memory_space=pltpu.MemorySpace.SMEM),  # cam_tab
                gb_spec,  # normals
                gb_spec,  # positions
                gb_spec,  # albedo
            ],
            out_specs=pl.BlockSpec(
                (1, 3, tr, Cw), lambda b, t, v: (v * B + b, 0, t, 0)
            ),
            scratch_shapes=[pltpu.VMEM((3, tr, Cw), jnp.float32)],
        ),
        compiler_params=pltpu.CompilerParams(
            dimension_semantics=("parallel", "parallel", "arbitrary"),
            vmem_limit_bytes=32 * 1024 * 1024,
        ),
    )(cam_tab, nrm, pos, alb)

    if lane_dense:
        out = out.reshape(V * B, 3, H, W)    # free contiguous reshape, no copy
    return out


class MVSRenderLayer:
    """JAX counterpart of the torch MVSRenderLayer: per-camera render, cat(dim=0)."""

    def __init__(self, cameras, keep_output=False, attr="mvs"):
        self.cameras = cameras
        self.keep = keep_output
        self.attr = attr

    def size(self):
        return self.cameras.shape[0]

    def __call__(self, data):
        out = mvs_render_pallas(self.cameras, data.normals, data.positions, data.albedo)
        if self.keep:
            setattr(data, self.attr, out)
        return out


def _reference(cameras, normals, positions, albedo):
    """Pure-JAX reference (same math as the kernel)."""
    eps = jnp.float32(_EPS)
    outs = []
    for i in range(cameras.shape[0]):
        c = cameras[i]
        inv_c = lax.rsqrt(jnp.sum(c * c) + eps)
        L = (-c * inv_c)[None, :, None, None]
        n = normals * lax.rsqrt(jnp.sum(normals**2, 1, keepdims=True) + eps)
        vdir = c[None, :, None, None] - positions
        vdir = vdir * lax.rsqrt(jnp.sum(vdir**2, 1, keepdims=True) + eps)
        diff = jnp.maximum(jnp.sum(n * L, 1, keepdims=True), 0.0)
        h = L + vdir
        h = h * lax.rsqrt(jnp.sum(h**2, 1, keepdims=True) + eps)
        spec = jnp.maximum(jnp.sum(n * h, 1, keepdims=True), 0.0) ** _SHININESS
        outs.append(albedo * (jnp.float32(_AMBIENT) + diff) + spec)
    return jnp.concatenate(outs, axis=0)


def _make_inputs(key, B, H, W):
    k1, k2, k3 = jax.random.split(key, 3)
    return (
        jax.random.normal(k1, (B, 3, H, W), dtype=jnp.float32),
        jax.random.normal(k2, (B, 3, H, W), dtype=jnp.float32),
        jax.random.uniform(k3, (B, 3, H, W), dtype=jnp.float32),
    )


def _run_case(key, cameras, B, H, W, **kw):
    normals, positions, albedo = _make_inputs(key, B, H, W)
    out = jax.block_until_ready(
        mvs_render_pallas(cameras, normals, positions, albedo, **kw)
    )
    assert out.shape == (cameras.shape[0] * B, 3, H, W), out.shape
    ref = _reference(cameras, normals, positions, albedo)
    np.testing.assert_allclose(np.asarray(out), np.asarray(ref), rtol=1e-4, atol=1e-4)


if __name__ == "__main__":
    key = jax.random.PRNGKey(0)
    ka, kb, kc, kd = jax.random.split(key, 4)

    # Deterministic camera positions (V = 3 views).
    cameras = jnp.array(
        [[2.0, 0.0, 1.0], [0.0, 2.0, 1.0], [-1.0, -1.0, 2.0]], dtype=jnp.float32
    )

    # 1) Lane-dense flattened path (H*W % 128 == 0), single full-extent row tile.
    _run_case(ka, cameras, B=2, H=16, W=16)
    # 2) Non-128-aligned size: native (B,3,H,W) layout, zero pad/slice copies.
    _run_case(kb, cameras, B=2, H=17, W=17)
    # 3) Multi-tile path with a masked partial last row-tile + per-tile scratch reuse.
    _run_case(kc, cameras, B=1, H=24, W=64, target_tile_elems=1024)

    # Layer wrapper (keep_output semantics), matching the torch module interface.
    normals, positions, albedo = _make_inputs(kd, 2, 16, 16)
    data = types.SimpleNamespace(normals=normals, positions=positions, albedo=albedo)
    layer = MVSRenderLayer(cameras, keep_output=True, attr="mvs")
    out = jax.block_until_ready(layer(data))
    assert out.shape == (layer.size() * 2, 3, 16, 16)
    assert data.mvs is out

    print("KERNEL_OK")
</pallas_src>

<mosaic_0001>
module attributes {stable_mosaic.version = 11 : i64} {
  func.func @_shade_kernel(%arg0: i32, %arg1: i32, %arg2: i32, %arg3: memref<3x6xf32, #tpu.memory_space<smem>>, %arg4: memref<1x3x2x128xf32, #tpu.memory_space<vmem>>, %arg5: memref<1x3x2x128xf32, #tpu.memory_space<vmem>>, %arg6: memref<1x3x2x128xf32, #tpu.memory_space<vmem>>, %arg7: memref<1x3x2x128xf32, #tpu.memory_space<vmem>>, %arg8: memref<3x2x128xf32, #tpu.memory_space<vmem>>) attributes {dimension_semantics = [#tpu.dimension_semantics<parallel>, #tpu.dimension_semantics<parallel>, #tpu.dimension_semantics<arbitrary>], iteration_bounds = array<i64: 2, 1, 3>, scalar_prefetch = 0 : i64, scratch_operands = 1 : i64, tpu.core_type = #tpu.core_type<tc>, window_params = [{transform_indices = @transform_0, window_bounds = array<i64: 3, 6>}, {transform_indices = @transform_1, window_bounds = array<i64: 1, 3, 2, 128>}, {transform_indices = @transform_2, window_bounds = array<i64: 1, 3, 2, 128>}, {transform_indices = @transform_3, window_bounds = array<i64: 1, 3, 2, 128>}, {transform_indices = @transform_4, window_bounds = array<i64: 1, 3, 2, 128>}]} {
    %c0_i32 = arith.constant 0 : i32
    %0 = arith.cmpi eq, %arg2, %c0_i32 : i32
    %1 = arith.extui %0 : i1 to i32
    %cst = arith.constant 9.99999993E-9 : f32
    %c0_i32_0 = arith.constant 0 : i32
    %2 = arith.cmpi ne, %1, %c0_i32_0 : i32
    scf.if %2 {
      %c0_35 = arith.constant 0 : index
      %c0_36 = arith.constant 0 : index
      %c0_37 = arith.constant 0 : index
      %c0_38 = arith.constant 0 : index
      %93 = vector.load %arg4[%c0_35, %c0_36, %c0_37, %c0_38] : memref<1x3x2x128xf32, #tpu.memory_space<vmem>>, vector<1x1x2x128xf32>
      %94 = vector.shape_cast %93 : vector<1x1x2x128xf32> to vector<2x128xf32>
      %c0_39 = arith.constant 0 : index
      %c1_40 = arith.constant 1 : index
      %c0_41 = arith.constant 0 : index
      %c0_42 = arith.constant 0 : index
      %95 = vector.load %arg4[%c0_39, %c1_40, %c0_41, %c0_42] : memref<1x3x2x128xf32, #tpu.memory_space<vmem>>, vector<1x1x2x128xf32>
      %96 = vector.shape_cast %95 : vector<1x1x2x128xf32> to vector<2x128xf32>
      %c0_43 = arith.constant 0 : index
      %c2_44 = arith.constant 2 : index
      %c0_45 = arith.constant 0 : index
      %c0_46 = arith.constant 0 : index
      %97 = vector.load %arg4[%c0_43, %c2_44, %c0_45, %c0_46] : memref<1x3x2x128xf32, #tpu.memory_space<vmem>>, vector<1x1x2x128xf32>
      %98 = vector.shape_cast %97 : vector<1x1x2x128xf32> to vector<2x128xf32>
      %99 = arith.mulf %94, %94 : vector<2x128xf32>
      %100 = arith.mulf %96, %96 : vector<2x128xf32>
      %101 = arith.addf %99, %100 : vector<2x128xf32>
      %102 = arith.mulf %98, %98 : vector<2x128xf32>
      %103 = arith.addf %101, %102 : vector<2x128xf32>
      %104 = vector.broadcast %cst : f32 to vector<2x128xf32>
      %105 = arith.addf %103, %104 : vector<2x128xf32>
      %106 = math.rsqrt %105 : vector<2x128xf32>
      %107 = arith.mulf %94, %106 : vector<2x128xf32>
      %c0_47 = arith.constant 0 : index
      %c0_48 = arith.constant 0 : index
      %c0_49 = arith.constant 0 : index
      %108 = vector.load %arg8[%c0_47, %c0_48, %c0_49] : memref<3x2x128xf32, #tpu.memory_space<vmem>>, vector<1x2x128xf32>
      %109 = vector.shape_cast %108 : vector<1x2x128xf32> to vector<2x128xf32>
      %110 = vector.shape_cast %107 : vector<2x128xf32> to vector<1x2x128xf32>
      tpu.vector_store %arg8[%c0_47, %c0_48, %c0_49], %110 {strides = array<i32>} : memref<3x2x128xf32, #tpu.memory_space<vmem>>, vector<1x2x128xf32>,
      %111 = arith.mulf %96, %106 : vector<2x128xf32>
      %c1_50 = arith.constant 1 : index
      %c0_51 = arith.constant 0 : index
      %c0_52 = arith.constant 0 : index
      %112 = vector.load %arg8[%c1_50, %c0_51, %c0_52] : memref<3x2x128xf32, #tpu.memory_space<vmem>>, vector<1x2x128xf32>
      %113 = vector.shape_cast %112 : vector<1x2x128xf32> to vector<2x128xf32>
      %114 = vector.shape_cast %111 : vector<2x128xf32> to vector<1x2x128xf32>
      tpu.vector_store %arg8[%c1_50, %c0_51, %c0_52], %114 {strides = array<i32>} : memref<3x2x128xf32, #tpu.memory_space<vmem>>, vector<1x2x128xf32>,
      %115 = arith.mulf %98, %106 : vector<2x128xf32>
      %c2_53 = arith.constant 2 : index
      %c0_54 = arith.constant 0 : index
      %c0_55 = arith.constant 0 : index
      %116 = vector.load %arg8[%c2_53, %c0_54, %c0_55] : memref<3x2x128xf32, #tpu.memory_space<vmem>>, vector<1x2x128xf32>
      %117 = vector.shape_cast %116 : vector<1x2x128xf32> to vector<2x128xf32>
      %118 = vector.shape_cast %115 : vector<2x128xf32> to vector<1x2x128xf32>
      tpu.vector_store %arg8[%c2_53, %c0_54, %c0_55], %118 {strides = array<i32>} : memref<3x2x128xf32, #tpu.memory_space<vmem>>, vector<1x2x128xf32>,
    } else {
    }
    %c0 = arith.constant 0 : index
    %c0_1 = arith.constant 0 : index
    %c0_2 = arith.constant 0 : index
    %3 = vector.load %arg8[%c0, %c0_1, %c0_2] : memref<3x2x128xf32, #tpu.memory_space<vmem>>, vector<1x2x128xf32>
    %4 = vector.shape_cast %3 : vector<1x2x128xf32> to vector<2x128xf32>
    %c1 = arith.constant 1 : index
    %c0_3 = arith.constant 0 : index
    %c0_4 = arith.constant 0 : index
    %5 = vector.load %arg8[%c1, %c0_3, %c0_4] : memref<3x2x128xf32, #tpu.memory_space<vmem>>, vector<1x2x128xf32>
    %6 = vector.shape_cast %5 : vector<1x2x128xf32> to vector<2x128xf32>
    %c2 = arith.constant 2 : index
    %c0_5 = arith.constant 0 : index
    %c0_6 = arith.constant 0 : index
    %7 = vector.load %arg8[%c2, %c0_5, %c0_6] : memref<3x2x128xf32, #tpu.memory_space<vmem>>, vector<1x2x128xf32>
    %8 = vector.shape_cast %7 : vector<1x2x128xf32> to vector<2x128xf32>
    %9 = arith.index_cast %arg2 : i32 to index
    %c0_7 = arith.constant 0 : index
    %10 = memref.load %arg3[%9, %c0_7] : memref<3x6xf32, #tpu.memory_space<smem>>
    %11 = arith.index_cast %arg2 : i32 to index
    %c1_8 = arith.constant 1 : index
    %12 = memref.load %arg3[%11, %c1_8] : memref<3x6xf32, #tpu.memory_space<smem>>
    %13 = arith.index_cast %arg2 : i32 to index
    %c2_9 = arith.constant 2 : index
    %14 = memref.load %arg3[%13, %c2_9] : memref<3x6xf32, #tpu.memory_space<smem>>
    %15 = arith.index_cast %arg2 : i32 to index
    %c3 = arith.constant 3 : index
    %16 = memref.load %arg3[%15, %c3] : memref<3x6xf32, #tpu.memory_space<smem>>
    %17 = arith.index_cast %arg2 : i32 to index
    %c4 = arith.constant 4 : index
    %18 = memref.load %arg3[%17, %c4] : memref<3x6xf32, #tpu.memory_space<smem>>
    %19 = arith.index_cast %arg2 : i32 to index
    %c5 = arith.constant 5 : index
    %20 = memref.load %arg3[%19, %c5] : memref<3x6xf32, #tpu.memory_space<smem>>
    %c0_10 = arith.constant 0 : index
    %c0_11 = arith.constant 0 : index
    %c0_12 = arith.constant 0 : index
    %c0_13 = arith.constant 0 : index
    %21 = vector.load %arg5[%c0_10, %c0_11, %c0_12, %c0_13] : memref<1x3x2x128xf32, #tpu.memory_space<vmem>>, vector<1x1x2x128xf32>
    %22 = vector.shape_cast %21 : vector<1x1x2x128xf32> to vector<2x128xf32>
    %c0_14 = arith.constant 0 : index
    %c1_15 = arith.constant 1 : index
    %c0_16 = arith.constant 0 : index
    %c0_17 = arith.constant 0 : index
    %23 = vector.load %arg5[%c0_14, %c1_15, %c0_16, %c0_17] : memref<1x3x2x128xf32, #tpu.memory_space<vmem>>, vector<1x1x2x128xf32>
    %24 = vector.shape_cast %23 : vector<1x1x2x128xf32> to vector<2x128xf32>
    %c0_18 = arith.constant 0 : index
    %c2_19 = arith.constant 2 : index
    %c0_20 = arith.constant 0 : index
    %c0_21 = arith.constant 0 : index
    %25 = vector.load %arg5[%c0_18, %c2_19, %c0_20, %c0_21] : memref<1x3x2x128xf32, #tpu.memory_space<vmem>>, vector<1x1x2x128xf32>
    %26 = vector.shape_cast %25 : vector<1x1x2x128xf32> to vector<2x128xf32>
    %27 = vector.broadcast %10 : f32 to vector<2x128xf32>
    %28 = arith.subf %27, %22 : vector<2x128xf32>
    %29 = vector.broadcast %12 : f32 to vector<2x128xf32>
    %30 = arith.subf %29, %24 : vector<2x128xf32>
    %31 = vector.broadcast %14 : f32 to vector<2x128xf32>
    %32 = arith.subf %31, %26 : vector<2x128xf32>
    %33 = arith.mulf %28, %28 : vector<2x128xf32>
    %34 = arith.mulf %30, %30 : vector<2x128xf32>
    %35 = arith.addf %33, %34 : vector<2x128xf32>
    %36 = arith.mulf %32, %32 : vector<2x128xf32>
    %37 = arith.addf %35, %36 : vector<2x128xf32>
    %cst_22 = arith.constant 9.99999993E-9 : f32
    %38 = vector.broadcast %cst_22 : f32 to vector<2x128xf32>
    %39 = arith.addf %37, %38 : vector<2x128xf32>
    %40 = math.rsqrt %39 : vector<2x128xf32>
    %41 = arith.mulf %28, %40 : vector<2x128xf32>
    %42 = arith.mulf %30, %40 : vector<2x128xf32>
    %43 = arith.mulf %32, %40 : vector<2x128xf32>
    %44 = vector.broadcast %16 : f32 to vector<2x128xf32>
    %45 = arith.mulf %4, %44 : vector<2x128xf32>
    %46 = vector.broadcast %18 : f32 to vector<2x128xf32>
    %47 = arith.mulf %6, %46 : vector<2x128xf32>
    %48 = arith.addf %45, %47 : vector<2x128xf32>
    %49 = vector.broadcast %20 : f32 to vector<2x128xf32>
    %50 = arith.mulf %8, %49 : vector<2x128xf32>
    %51 = arith.addf %48, %50 : vector<2x128xf32>
    %cst_23 = arith.constant 0.000000e+00 : f32
    %52 = vector.broadcast %cst_23 : f32 to vector<2x128xf32>
    %53 = arith.maximumf %51, %52 : vector<2x128xf32>
    %54 = vector.broadcast %16 : f32 to vector<2x128xf32>
    %55 = arith.addf %54, %41 : vector<2x128xf32>
    %56 = vector.broadcast %18 : f32 to vector<2x128xf32>
    %57 = arith.addf %56, %42 : vector<2x128xf32>
    %58 = vector.broadcast %20 : f32 to vector<2x128xf32>
    %59 = arith.addf %58, %43 : vector<2x128xf32>
    %60 = arith.mulf %55, %55 : vector<2x128xf32>
    %61 = arith.mulf %57, %57 : vector<2x128xf32>
    %62 = arith.addf %60, %61 : vector<2x128xf32>
    %63 = arith.mulf %59, %59 : vector<2x128xf32>
    %64 = arith.addf %62, %63 : vector<2x128xf32>
    %cst_24 = arith.constant 9.99999993E-9 : f32
    %65 = vector.broadcast %cst_24 : f32 to vector<2x128xf32>
    %66 = arith.addf %64, %65 : vector<2x128xf32>
    %67 = math.rsqrt %66 : vector<2x128xf32>
    %68 = arith.mulf %4, %55 : vector<2x128xf32>
    %69 = arith.mulf %6, %57 : vector<2x128xf32>
    %70 = arith.addf %68, %69 : vector<2x128xf32>
    %71 = arith.mulf %8, %59 : vector<2x128xf32>
    %72 = arith.addf %70, %71 : vector<2x128xf32>
    %73 = arith.mulf %72, %67 : vector<2x128xf32>
    %cst_25 = arith.constant 0.000000e+00 : f32
    %74 = vector.broadcast %cst_25 : f32 to vector<2x128xf32>
    %75 = arith.maximumf %73, %74 : vector<2x128xf32>
    %76 = arith.mulf %75, %75 : vector<2x128xf32>
    %77 = arith.mulf %76, %76 : vector<2x128xf32>
    %78 = arith.mulf %77, %77 : vector<2x128xf32>
    %79 = arith.mulf %78, %78 : vector<2x128xf32>
    %cst_26 = arith.constant 1.000000e-01 : f32
    %80 = vector.broadcast %cst_26 : f32 to vector<2x128xf32>
    %81 = arith.addf %80, %53 : vector<2x128xf32>
    %c0_27 = arith.constant 0 : index
    %c0_28 = arith.constant 0 : index
    %c0_29 = arith.constant 0 : index
    %c0_30 = arith.constant 0 : index
    %82 = vector.load %arg6[%c0_27, %c0_28, %c0_29, %c0_30] : memref<1x3x2x128xf32, #tpu.memory_space<vmem>>, vector<1x3x2x128xf32>
    %83 = vector.shape_cast %82 : vector<1x3x2x128xf32> to vector<3x2x128xf32>
    %84 = vector.shape_cast %81 : vector<2x128xf32> to vector<1x2x128xf32>
    %85 = vector.broadcast %84 : vector<1x2x128xf32> to vector<3x2x128xf32>
    %86 = arith.mulf %83, %85 : vector<3x2x128xf32>
    %87 = vector.shape_cast %79 : vector<2x128xf32> to vector<1x2x128xf32>
    %88 = vector.broadcast %87 : vector<1x2x128xf32> to vector<3x2x128xf32>
    %89 = arith.addf %86, %88 : vector<3x2x128xf32>
    %c0_31 = arith.constant 0 : index
    %c0_32 = arith.constant 0 : index
    %c0_33 = arith.constant 0 : index
    %c0_34 = arith.constant 0 : index
    %90 = vector.load %arg7[%c0_31, %c0_32, %c0_33, %c0_34] : memref<1x3x2x128xf32, #tpu.memory_space<vmem>>, vector<1x3x2x128xf32>
    %91 = vector.shape_cast %90 : vector<1x3x2x128xf32> to vector<3x2x128xf32>
    %92 = vector.shape_cast %89 : vector<3x2x128xf32> to vector<1x3x2x128xf32>
    tpu.vector_store %arg7[%c0_31, %c0_32, %c0_33, %c0_34], %92 {strides = array<i32>} : memref<1x3x2x128xf32, #tpu.memory_space<vmem>>, vector<1x3x2x128xf32>,
    return
  }
  func.func @transform_0(%arg0: i32, %arg1: i32, %arg2: i32) -> (i32, i32) {
    %c0_i32 = arith.constant 0 : i32
    %c0_i32_0 = arith.constant 0 : i32
    %c0_i32_1 = arith.constant 0 : i32
    return %c0_i32, %c0_i32_0 : i32, i32
  }
  func.func @transform_1(%arg0: i32, %arg1: i32, %arg2: i32) -> (i32, i32, i32, i32) {
    %c0_i32 = arith.constant 0 : i32
    %c0_i32_0 = arith.constant 0 : i32
    %c0_i32_1 = arith.constant 0 : i32
    return %arg0, %c0_i32, %arg1, %c0_i32_0 : i32, i32, i32, i32
  }
  func.func @transform_2(%arg0: i32, %arg1: i32, %arg2: i32) -> (i32, i32, i32, i32) {
    %c0_i32 = arith.constant 0 : i32
    %c0_i32_0 = arith.constant 0 : i32
    %c0_i32_1 = arith.constant 0 : i32
    return %arg0, %c0_i32, %arg1, %c0_i32_0 : i32, i32, i32, i32
  }
  func.func @transform_3(%arg0: i32, %arg1: i32, %arg2: i32) -> (i32, i32, i32, i32) {
    %c0_i32 = arith.constant 0 : i32
    %c0_i32_0 = arith.constant 0 : i32
    %c0_i32_1 = arith.constant 0 : i32
    return %arg0, %c0_i32, %arg1, %c0_i32_0 : i32, i32, i32, i32
  }
  func.func @transform_4(%arg0: i32, %arg1: i32, %arg2: i32) -> (i32, i32, i32, i32) {
    %c2_i32 = arith.constant 2 : i32
    %0 = arith.muli %arg2, %c2_i32 : i32
    %1 = arith.addi %0, %arg0 : i32
    %c0_i32 = arith.constant 0 : i32
    %c0_i32_0 = arith.constant 0 : i32
    %c0_i32_1 = arith.constant 0 : i32
    return %1, %c0_i32, %arg1, %c0_i32_0 : i32, i32, i32, i32
  }
}

</mosaic_0001>

<bundles_post_ra>
// kernel: mvs_render_pallas.1
= control target key start
LH: loop header
LB: loop body
LE: loop exit
PB: predicated region body
PF: predicated region fallthrough
CT: control target
= control target key end

     0   :  { %9 = vsyncpa [#allocation4], 0  ;;  %s737_s15 = smov 0   ;;  %s739_s16 = smov 0   ;;  %s841_s0 = inlined_call_operand.vmem [shape: f32[3,6], index: 0, kind: input, shape index: {}]   ;;  %s842_s1 = inlined_call_operand.vmem [shape: f32[2,3,2,128], index: 1, kind: input, shape index: {}]   ;;  %s843_s2 = inlined_call_operand.vmem [shape: f32[2,3,2,128], index: 2, kind: input, shape index: {}]   ;;  %s844_s3 = inlined_call_operand.vmem [shape: f32[2,3,2,128], index: 3, kind: input, shape index: {}]   ;;  %s845_s4 = inlined_call_operand.vmem [shape: f32[6,3,2,128], index: 4, kind: output, shape index: {}]  }
   0x1   :  { %s741_s17 = smov 0   ;;  %s743_s18 = smov 0  }
   0x2   :  { %s745_s19 = smov 0  }
   0x3 LB: > { %s571_s20 = sadd.s32 4294967295, %s709_s19   ;;  %s27_s21 = sadd.s32 1, %s701_s17  ;;  %s709_s19 = sphi %s745_s19, %s15_s19   ;;  %s705_s18 = sphi %s743_s18, %s851_s18   ;;  %s701_s17 = sphi %s741_s17, %s850_s17   ;;  %s697_s16 = sphi %s739_s16, %s849_s16   ;;  %s693_s15 = sphi %s737_s15, %s848_s15  }
   0x4   : > { %p28_p0 = scmp.ge.s32.totalorder %s27_s21, 3  ;;  %s34_s22 = sadd.s32 1, %s705_s18 }
   0x5   : > { %p575_p1 = scmp.ge.s32.totalorder %s709_s19, 1  ;;  %p176_p2 = scmp.lt.s32.totalorder %s709_s19, 7 }
   0x6   : > { %s853_s21 = smov (%p28_p0, %s27_s21), 0  ;;  %s855_s22 = smov (!%p28_p0, %s34_s22), %s705_s18 }
   0x7   : > { %p770_p3 = pnand %p575_p1, %p176_p2  ;;  %p36_p4 = scmp.ge.s32.totalorder %s855_s22, 2 }
   0x8   : > { %p774_p5 = scmp.eq.s32.totalorder %s571_s20, 0  ;;  %s189_s27 = sshll.u32 %s841_s0, 4  ;;  %s190_s27 = int_to_ptr.vmem [resolvable:$true] %s189_s27 }
   0x9   : > { %p599_p6 = pneg %p770_p3  ;;  %s857_s22 = smov (%p36_p4, %s855_s22), 0 }
   0xa   : > { %s652_s28 = scalar_lea.vmem %s190_s27, 64  ;;  %p660_p12 = scmp.lt.s32.totalorder %s190_s27, %s190_s27 }
   0xb   : > { %p600_p7 = pnand %p774_p5, %p599_p6  ;;  %p653_p8 = scmp.ne.s32.totalorder %s190_s27, %s652_s28 }
   0xc   : > { %p661_p13 = scmp.lt.s32.totalorder %s652_s28, %s652_s28 }
   0xd   : > { %p654_p9 = pneg %p600_p7 }
   0xe   : > { %p662_p0 = por %p661_p13, %p660_p12 }
   0xf   : > { %p655_p10 = pnand %p654_p9, %p653_p8 }
  0x11   : > { %p656_p11 = pneg %p655_p10 }
  0x13   : > { %p663_p1 = pnand %p662_p0, %p656_p11 }
  0x15   : > { %666 = shalt.err (!%p663_p1)
}
  0x16   : > { %s711_s29 = smov [#allocation3]   ;;  %235 = sbr.rel (%p770_p3) target bundleno = 131 (0x83), region = 36 }
  0x17   : > { %602 = dma.vmem_to_smem (!%p600_p7), %s190_s27, 64, %s711_s29, [#allocation4]  }
  0x1d   : > { %688 = dma.done.wait (%p774_p5), [#allocation4], 64  }
  0x1e   : > { %690 = vsyncadd (%p774_p5), [#allocation4], 4294967232 }
  0x1f   : > { %241 = sfence }
  0x20   : > { %p286_p2 = scmp.lt.s32.totalorder %s697_s16, 1  ;;  %s583_s30 = sshll.u32 %s693_s15, 1 }
  0x21   : > { %s311_s5 = sadd.s32 %s697_s16, %s583_s30  ;;  %p585_p3 = scmp.ne.s32.totalorder %s693_s15, 0 }
  0x22   : > { %s859_s16 = smov (!%p286_p2, %s697_s16), 1  ;;  %p312_p4 = scmp.lt.s32.totalorder %s311_s5, 5 }
  0x23   : > { %s593_s6 = smul.u32 6, %s859_s16 }
  0x24   : > { %s861_s5 = smov (!%p312_p4, %s311_s5), 5  ;;  %325 = sbr.rel (%p585_p3) target bundleno = 62 (0x3e), region = 44 }
  0x25   : > { %s293_s9 = scalar_lea.vmem %s842_s1, %s593_s6  ;;  %s803_s12 = scalar_lea.vmem %s843_s2, %s593_s6 }
  0x26   : > { %s808_s20 = scalar_lea.vmem %s844_s3, %s593_s6  ;;  %s594_s23 = smul.u32 6, %s861_s5  ;;  %v326_v0 = vld [vmem:[%s293_s9] sm:$0x3] (!%p585_p3)  ;;  %v586_v1 = vld [vmem:[%s293_s9 + $0x2] sm:$0x3] (!%p585_p3) }
  0x27   : > { %v587_v2 = vld [vmem:[%s293_s9 + $0x4] sm:$0x3] (!%p585_p3)  ;;  %v331_v3 = vmul.f32 (!%p585_p3), %v326_v0, %v326_v0  ;;  %v332_v4 = vmul.f32 (!%p585_p3), %v586_v1, %v586_v1 }
  0x28   : > { %s813_s16 = scalar_lea.vmem %s845_s4, %s594_s23  ;;  %v334_v5 = vmul.f32 (!%p585_p3), %v587_v2, %v587_v2 }
  0x29   : > { %v333_v6 = vadd.f32 (!%p585_p3), %v332_v4, %v331_v3 }
  0x2b   : > { %v335_v7 = vadd.f32 %v334_v5, %v333_v6 }
  0x2d   : > { %v336_v8 = vadd.f32 1e-08, %v335_v7 }
  0x2f   : > { %646 = vrsqrt.f32 %v336_v8 }
  0x39   : > { %v647_v9 = vpop.eup %646 }
  0x3a   : > { %v338_v10 = vmul.f32 %v647_v9, %v326_v0  ;;  %v340_v11 = vmul.f32 %v647_v9, %v586_v1  ;;  %v343_v12 = vmul.f32 %v647_v9, %v587_v2 }
  0x3c   : > { %339 = vst [vmem:[#allocation2] sm:$0x3] %v338_v10  ;;  %342 = vst [vmem:[#allocation2 + $0x2] sm:$0x3] %v340_v11 }
  0x3d   : > { %345 = vst [vmem:[#allocation2 + $0x4] sm:$0x3] %v343_v12 }
  0x3e PF: > { %s588_s26 = sshll.u32 %s693_s15, 7  ;;  %v363_v13 = vld [vmem:[%s803_s12] sm:$0x3]  ;;  %v589_v14 = vld [vmem:[%s803_s12 + $0x2] sm:$0x3] }
  0x3f   : > { %s352_s27 = sld [smem:[#allocation3 + %s588_s26]]  ;;  %s353_s28 = sadd.s32 1, %s588_s26  ;;  %v590_v15 = vld [vmem:[%s803_s12 + $0x4] sm:$0x3]  ;;  %v415_v63 = vld [vmem:[%s808_s20] sm:$0x3] }
  0x40   : > { %s354_s29 = sld [smem:[#allocation3 + %s353_s28]]  ;;  %s355_s30 = sadd.s32 2, %s588_s26  ;;  %v416_v0 = vld [vmem:[%s808_s20 + $0x2] sm:$0x3]  ;;  %v417_v1 = vld [vmem:[%s808_s20 + $0x4] sm:$0x3] }
  0x41   : > { %s356_s5 = sld [smem:[#allocation3 + %s355_s30]]  ;;  %s357_s15 = sadd.s32 3, %s588_s26 }
  0x42   : > { %s359_s6 = sadd.s32 4, %s588_s26  ;;  %s361_s7 = sadd.s32 5, %s588_s26 }
  0x43   : > { %s358_s8 = sld [smem:[#allocation3 + %s357_s15]]  ;;  %v346_v42 = vld [vmem:[#allocation2] sm:$0x3]  ;;  %v348_v43 = vld [vmem:[#allocation2 + $0x2] sm:$0x3] }
  0x44   : > { %s360_s9 = sld [smem:[#allocation3 + %s359_s6]]  ;;  %v350_v50 = vld [vmem:[#allocation2 + $0x4] sm:$0x3] }
  0x45   : > { %v368_v16 = vstv %s352_s27  ;;  %s362_s10 = sld [smem:[#allocation3 + %s361_s7]] }
  0x46   : > { %v369_v17 = vsub.f32 %v368_v16, %v363_v13  ;;  %v370_v18 = vstv %s354_s29 }
  0x47   : > { %v371_v19 = vsub.f32 %v370_v18, %v589_v14  ;;  %v372_v20 = vstv %s356_s5 }
  0x48   : > { %v373_v21 = vsub.f32 %v372_v20, %v590_v15  ;;  %v374_v22 = vmul.f32 %v369_v17, %v369_v17 }
  0x49   : > { %v375_v23 = vmul.f32 %v371_v19, %v371_v19  ;;  %v384_v29 = vstv %s358_s8 }
  0x4a   : > { %v377_v24 = vmul.f32 %v373_v21, %v373_v21  ;;  %v386_v30 = vstv %s360_s9  ;;  %v385_v46 = vmul.f32 %v384_v29, %v346_v42 }
  0x4b   : > { %v376_v25 = vadd.f32 %v375_v23, %v374_v22  ;;  %v389_v31 = vstv %s362_s10  ;;  %v387_v47 = vmul.f32 %v386_v30, %v348_v43 }
  0x4c   : > { %v390_v52 = vmul.f32 %v389_v31, %v350_v50 }
  0x4d   : > { %v378_v26 = vadd.f32 %v377_v24, %v376_v25  ;;  %v388_v51 = vadd.f32 %v387_v47, %v385_v46 }
  0x4f   : > { %v379_v27 = vadd.f32 1e-08, %v378_v26  ;;  %v391_v55 = vadd.f32 %v390_v52, %v388_v51 }
  0x51   : > { %648 = vrsqrt.f32 %v379_v27  ;;  %v392_v58 = vmax.f32 %v391_v55, 0.0 }
  0x53   : > { %v414_v62 = vadd.f32 0.1, %v392_v58 }
  0x55   : > { %v418_v4 = vmul.f32 %v415_v63, %v414_v62  ;;  %v419_v5 = vmul.f32 %v416_v0, %v414_v62  ;;  %v420_v6 = vmul.f32 %v417_v1, %v414_v62 }
  0x5b   : > { %v649_v28 = vpop.eup %648 }
  0x5c   : > { %v381_v32 = vmul.f32 %v649_v28, %v369_v17  ;;  %v382_v33 = vmul.f32 %v649_v28, %v371_v19  ;;  %v383_v34 = vmul.f32 %v649_v28, %v373_v21 }
  0x5e   : > { %v393_v35 = vadd.f32 %v384_v29, %v381_v32  ;;  %v394_v36 = vadd.f32 %v386_v30, %v382_v33  ;;  %v395_v37 = vadd.f32 %v389_v31, %v383_v34 }
  0x60   : > { %v396_v38 = vmul.f32 %v393_v35, %v393_v35  ;;  %v397_v39 = vmul.f32 %v394_v36, %v394_v36  ;;  %v399_v40 = vmul.f32 %v395_v37, %v395_v37  ;;  %v403_v48 = vmul.f32 %v393_v35, %v346_v42 }
  0x61   : > { %v404_v49 = vmul.f32 %v394_v36, %v348_v43  ;;  %v406_v54 = vmul.f32 %v395_v37, %v350_v50 }
  0x62   : > { %v398_v41 = vadd.f32 %v397_v39, %v396_v38 }
  0x63   : > { %v405_v53 = vadd.f32 %v404_v49, %v403_v48 }
  0x64   : > { %v400_v44 = vadd.f32 %v399_v40, %v398_v41 }
  0x65   : > { %v407_v56 = vadd.f32 %v406_v54, %v405_v53 }
  0x66   : > { %v401_v45 = vadd.f32 1e-08, %v400_v44 }
  0x68   : > { %650 = vrsqrt.f32 %v401_v45 }
  0x72   : > { %v651_v57 = vpop.eup %650 }
  0x73   : > { %v408_v59 = vmul.f32 %v651_v57, %v407_v56 }
  0x75   : > { %v409_v60 = vmax.f32 %v408_v59, 0.0 }
  0x77   : > { %v410_v61 = vmul.f32 %v409_v60, %v409_v60 }
  0x79   : > { %v411_v2 = vmul.f32 %v410_v61, %v410_v61 }
  0x7b   : > { %v412_v3 = vmul.f32 %v411_v2, %v411_v2 }
  0x7d   : > { %v413_v7 = vmul.f32 %v412_v3, %v412_v3 }
  0x7f   : > { %v421_v8 = vadd.f32 %v418_v4, %v413_v7  ;;  %v422_v9 = vadd.f32 %v419_v5, %v413_v7  ;;  %v423_v10 = vadd.f32 %v420_v6, %v413_v7 }
  0x81   : > { %424 = vst [vmem:[%s813_s16] sm:$0x3] %v421_v8  ;;  %425 = vst [vmem:[%s813_s16 + $0x2] sm:$0x3] %v422_v9 }
  0x82   : > { %426 = vst [vmem:[%s813_s16 + $0x4] sm:$0x3] %v423_v10 }
  0x83 PF: > { %s15_s19 = sadd.s32 1, %s709_s19   ;;  %s848_s15 = smov %s701_s17 }
  0x84   : > { %p12_p5 = scmp.ge.s32.totalorder %s15_s19, 8   ;;  %s849_s16 = smov %s705_s18 }
  0x85   : > { %s850_s17 = smov %s853_s21  ;;  %s851_s18 = smov %s857_s22 }
  0x86   :  { %14 = sbr.rel (!%p12_p5) target bundleno = 3 (0x3), region = 89 }
  0x8d   :  { %460 = vsyncpa [#allocation4], 1 }
  0x8e   :  { %462 = vsyncpa [#allocation4 + $0x1], 1 }

</bundles_post_ra>
